<compile_context>
chip_gen: v5e
topology: v5e:2x2
jax: 0.10.0
libtpu: 0.0.40
codegen_flags: <defaults>
</compile_context>

<pallas_src>
import functools

import jax
import jax.numpy as jnp
from jax.experimental import pallas as pl
from jax.experimental.pallas import tpu as pltpu

IGNORE_INDEX = 255


def _pow_static(x, gamma):
    """x ** gamma with gamma known at trace time; integer exponents avoid exp/log."""
    g = float(gamma)
    if g == 0.0:
        return jnp.ones_like(x)
    if g > 0 and g == int(g) and int(g) <= 8:
        r = x
        for _ in range(int(g) - 1):
            r = r * x
        return r
    return jnp.power(x, jnp.float32(g))


def _criterion_cons_kernel(logits_ref, labels_ref, conf_ref, out_ref,
                           num_acc, den_acc, *, gamma, num_classes,
                           l_total, tile_l):
    """Per (image, pixel-block) tile.

    logits_ref: (C, r, T)  input dtype (f32/bf16)
    labels_ref: (r, T)     int32
    conf_ref  : (r, T)     float
    num_acc/den_acc: (r, T) f32 VMEM partial-sum accumulators (persist across grid)
    """
    n = pl.program_id(0)
    j = pl.program_id(1)

    @pl.when(jnp.logical_and(n == 0, j == 0))
    def _():
        num_acc[...] = jnp.zeros_like(num_acc)
        den_acc[...] = jnp.zeros_like(den_acc)

    labels = labels_ref[...]                       # (r, T) int32
    conf = conf_ref[...].astype(jnp.float32)       # (r, T)

    # ---- per-pixel cross entropy, unrolled over classes (lane-parallel VALU) ----
    m = logits_ref[0].astype(jnp.float32)          # running max over classes
    for c in range(1, num_classes):
        m = jnp.maximum(m, logits_ref[c].astype(jnp.float32))

    s = jnp.zeros_like(m)                          # sum of exp
    logit_y = jnp.zeros_like(m)                    # logit at the label class
    for c in range(num_classes):
        row = logits_ref[c].astype(jnp.float32)
        s = s + jnp.exp(row - m)
        logit_y = logit_y + jnp.where(labels == c, row, 0.0)

    ce = m + jnp.log(s) - logit_y                  # logsumexp - logit[label]

    # ---- masks: ignore_index pixels -> zero CE; tail (out-of-range) pixels -> zero both
    lane = jax.lax.broadcasted_iota(jnp.int32, labels.shape, 1)
    in_bounds = (j * tile_l + lane) < l_total
    valid = jnp.logical_and(labels != IGNORE_INDEX, in_bounds)

    w = _pow_static(conf, gamma)
    w = jnp.where(in_bounds, w, 0.0)
    ce = jnp.where(valid, ce, 0.0)

    num_acc[...] += w * ce
    den_acc[...] += w

    @pl.when(jnp.logical_and(n == pl.num_programs(0) - 1,
                             j == pl.num_programs(1) - 1))
    def _():
        total_num = jnp.sum(num_acc[...])
        total_den = jnp.sum(den_acc[...])
        out_ref[...] = (total_num / (total_den + jnp.float32(1e-12))).reshape(1, 1)


def criterion_cons(preds, conf, gt, gamma, *, tile_l=2048):
    """preds: (N,C,H,W) float (f32 or bf16), conf: (N,H,W) float, gt: (N,H,W) int.

    Returns the scalar consistency loss (sample=False path).
    """
    N, C, H, W = preds.shape
    HW = H * W

    # Sublane factor: largest of 8/4/2/1 dividing H*W so pixel tiles (r, tile_l)
    # fill vregs densely.  All reshapes below are free (trailing-dim only).
    for r in (8, 4, 2, 1):
        if HW % r == 0:
            break
    L = HW // r

    logits = preds.reshape(N, C, r, L)                 # keep input dtype (bf16 ok)
    labels = gt.reshape(N, r, L).astype(jnp.int32)
    conf3d = conf.reshape(N, r, L)

    if L <= tile_l:
        tl = L                                          # single block, equals full dim
        nblocks = 1
    else:
        tl = max(128, (tile_l // 128) * 128)            # lane-aligned tile
        nblocks = pl.cdiv(L, tl)                        # tail masked in-kernel

    kernel = functools.partial(
        _criterion_cons_kernel, gamma=float(gamma), num_classes=C,
        l_total=L, tile_l=tl)

    out = pl.pallas_call(
        kernel,
        out_shape=jax.ShapeDtypeStruct((1, 1), jnp.float32),
        grid_spec=pltpu.PrefetchScalarGridSpec(
            num_scalar_prefetch=0,
            grid=(N, nblocks),
            in_specs=[
                pl.BlockSpec((pl.Squeezed(), C, r, tl), lambda n, j: (n, 0, 0, j)),
                pl.BlockSpec((pl.Squeezed(), r, tl), lambda n, j: (n, 0, j)),
                pl.BlockSpec((pl.Squeezed(), r, tl), lambda n, j: (n, 0, j)),
            ],
            out_specs=pl.BlockSpec((1, 1), lambda n, j: (0, 0)),
            scratch_shapes=[
                pltpu.VMEM((r, tl), jnp.float32),   # numerator partial sums
                pltpu.VMEM((r, tl), jnp.float32),   # denominator partial sums
            ],
        ),
        compiler_params=pltpu.CompilerParams(
            dimension_semantics=("arbitrary", "arbitrary")),
    )(logits, labels, conf3d)
    return out[0, 0]


def _reference(preds, conf, gt, gamma):
    """Plain-JAX reference mirroring the PyTorch forward (sample=False)."""
    logits = jnp.transpose(preds, (0, 2, 3, 1)).astype(jnp.float32)  # NHWC
    lse = jax.nn.logsumexp(logits, axis=-1)
    safe_gt = jnp.where(gt == IGNORE_INDEX, 0, gt)
    logit_y = jnp.take_along_axis(logits, safe_gt[..., None], axis=-1)[..., 0]
    ce = jnp.where(gt == IGNORE_INDEX, 0.0, lse - logit_y)
    w = jnp.power(conf.astype(jnp.float32), gamma)
    return jnp.sum(w * ce) / (jnp.sum(w) + 1e-12)


if __name__ == "__main__":
    key = jax.random.PRNGKey(0)
    k1, k2, k3, k4 = jax.random.split(key, 4)

    N, C, H, W = 2, 4, 16, 16
    gamma = 2.0

    preds = jax.random.normal(k1, (N, C, H, W), dtype=jnp.float32)
    conf = jax.random.uniform(k2, (N, H, W), dtype=jnp.float32)
    gt = jax.random.randint(k3, (N, H, W), 0, C, dtype=jnp.int32)
    # Sprinkle some ignore_index pixels
    ignore_mask = jax.random.uniform(k4, (N, H, W)) < 0.1
    gt = jnp.where(ignore_mask, IGNORE_INDEX, gt)

    loss = criterion_cons(preds, conf, gt, gamma)
    loss = jax.block_until_ready(loss)

    ref = jax.block_until_ready(_reference(preds, conf, gt, gamma))
    assert jnp.allclose(loss, ref, rtol=1e-4, atol=1e-5), (loss, ref)

    print("KERNEL_OK")
</pallas_src>

<mosaic_0001>
module attributes {stable_mosaic.version = 11 : i64} {
  func.func @_criterion_cons_kernel(%arg0: i32, %arg1: i32, %arg2: memref<1x4x8x32xf32, #tpu.memory_space<vmem>>, %arg3: memref<1x8x32xi32, #tpu.memory_space<vmem>>, %arg4: memref<1x8x32xf32, #tpu.memory_space<vmem>>, %arg5: memref<1x1xf32, #tpu.memory_space<vmem>>, %arg6: memref<8x32xf32, #tpu.memory_space<vmem>>, %arg7: memref<8x32xf32, #tpu.memory_space<vmem>>) attributes {dimension_semantics = [#tpu.dimension_semantics<arbitrary>, #tpu.dimension_semantics<arbitrary>], iteration_bounds = array<i64: 2, 1>, scalar_prefetch = 0 : i64, scratch_operands = 2 : i64, tpu.core_type = #tpu.core_type<tc>, window_params = [{transform_indices = @transform_0, window_bounds = array<i64: 1, 4, 8, 32>}, {transform_indices = @transform_1, window_bounds = array<i64: 1, 8, 32>}, {transform_indices = @transform_2, window_bounds = array<i64: 1, 8, 32>}, {pipeline_mode = #tpu.pipeline_mode<synchronous>, transform_indices = @transform_3, window_bounds = array<i64: 1, 1>}]} {
    %c0_i32 = arith.constant 0 : i32
    %0 = arith.cmpi eq, %arg0, %c0_i32 : i32
    %c0_i32_0 = arith.constant 0 : i32
    %1 = arith.cmpi eq, %arg1, %c0_i32_0 : i32
    %2 = arith.andi %0, %1 : i1
    %3 = arith.extui %2 : i1 to i32
    %c0_i32_1 = arith.constant 0 : i32
    %4 = arith.cmpi ne, %3, %c0_i32_1 : i32
    scf.if %4 {
      %cst_56 = arith.constant 0.000000e+00 : f32
      %91 = vector.broadcast %cst_56 : f32 to vector<8x32xf32>
      %c0_57 = arith.constant 0 : index
      %c0_58 = arith.constant 0 : index
      %92 = vector.load %arg6[%c0_57, %c0_58] : memref<8x32xf32, #tpu.memory_space<vmem>>, vector<8x32xf32>
      tpu.vector_store %arg6[%c0_57, %c0_58], %91 {strides = array<i32>} : memref<8x32xf32, #tpu.memory_space<vmem>>, vector<8x32xf32>,
      %cst_59 = arith.constant 0.000000e+00 : f32
      %93 = vector.broadcast %cst_59 : f32 to vector<8x32xf32>
      %c0_60 = arith.constant 0 : index
      %c0_61 = arith.constant 0 : index
      %94 = vector.load %arg7[%c0_60, %c0_61] : memref<8x32xf32, #tpu.memory_space<vmem>>, vector<8x32xf32>
      tpu.vector_store %arg7[%c0_60, %c0_61], %93 {strides = array<i32>} : memref<8x32xf32, #tpu.memory_space<vmem>>, vector<8x32xf32>,
    } else {
    }
    %c0 = arith.constant 0 : index
    %c0_2 = arith.constant 0 : index
    %c0_3 = arith.constant 0 : index
    %5 = vector.load %arg3[%c0, %c0_2, %c0_3] : memref<1x8x32xi32, #tpu.memory_space<vmem>>, vector<1x8x32xi32>
    %6 = vector.shape_cast %5 : vector<1x8x32xi32> to vector<8x32xi32>
    %c0_4 = arith.constant 0 : index
    %c0_5 = arith.constant 0 : index
    %c0_6 = arith.constant 0 : index
    %7 = vector.load %arg4[%c0_4, %c0_5, %c0_6] : memref<1x8x32xf32, #tpu.memory_space<vmem>>, vector<1x8x32xf32>
    %8 = vector.shape_cast %7 : vector<1x8x32xf32> to vector<8x32xf32>
    %c0_7 = arith.constant 0 : index
    %c0_8 = arith.constant 0 : index
    %c0_9 = arith.constant 0 : index
    %c0_10 = arith.constant 0 : index
    %9 = vector.load %arg2[%c0_7, %c0_8, %c0_9, %c0_10] : memref<1x4x8x32xf32, #tpu.memory_space<vmem>>, vector<1x1x8x32xf32>
    %10 = vector.shape_cast %9 : vector<1x1x8x32xf32> to vector<8x32xf32>
    %c0_11 = arith.constant 0 : index
    %c1 = arith.constant 1 : index
    %c0_12 = arith.constant 0 : index
    %c0_13 = arith.constant 0 : index
    %11 = vector.load %arg2[%c0_11, %c1, %c0_12, %c0_13] : memref<1x4x8x32xf32, #tpu.memory_space<vmem>>, vector<1x1x8x32xf32>
    %12 = vector.shape_cast %11 : vector<1x1x8x32xf32> to vector<8x32xf32>
    %13 = arith.maximumf %10, %12 : vector<8x32xf32>
    %c0_14 = arith.constant 0 : index
    %c2 = arith.constant 2 : index
    %c0_15 = arith.constant 0 : index
    %c0_16 = arith.constant 0 : index
    %14 = vector.load %arg2[%c0_14, %c2, %c0_15, %c0_16] : memref<1x4x8x32xf32, #tpu.memory_space<vmem>>, vector<1x1x8x32xf32>
    %15 = vector.shape_cast %14 : vector<1x1x8x32xf32> to vector<8x32xf32>
    %16 = arith.maximumf %13, %15 : vector<8x32xf32>
    %c0_17 = arith.constant 0 : index
    %c3 = arith.constant 3 : index
    %c0_18 = arith.constant 0 : index
    %c0_19 = arith.constant 0 : index
    %17 = vector.load %arg2[%c0_17, %c3, %c0_18, %c0_19] : memref<1x4x8x32xf32, #tpu.memory_space<vmem>>, vector<1x1x8x32xf32>
    %18 = vector.shape_cast %17 : vector<1x1x8x32xf32> to vector<8x32xf32>
    %19 = arith.maximumf %16, %18 : vector<8x32xf32>
    %cst = arith.constant 0.000000e+00 : f32
    %20 = vector.broadcast %cst : f32 to vector<8x32xf32>
    %cst_20 = arith.constant 0.000000e+00 : f32
    %21 = vector.broadcast %cst_20 : f32 to vector<8x32xf32>
    %c0_21 = arith.constant 0 : index
    %c0_22 = arith.constant 0 : index
    %c0_23 = arith.constant 0 : index
    %c0_24 = arith.constant 0 : index
    %22 = vector.load %arg2[%c0_21, %c0_22, %c0_23, %c0_24] : memref<1x4x8x32xf32, #tpu.memory_space<vmem>>, vector<1x1x8x32xf32>
    %23 = vector.shape_cast %22 : vector<1x1x8x32xf32> to vector<8x32xf32>
    %24 = arith.subf %23, %19 : vector<8x32xf32>
    %25 = math.exp %24 : vector<8x32xf32>
    %26 = arith.addf %20, %25 : vector<8x32xf32>
    %c0_i32_25 = arith.constant 0 : i32
    %27 = vector.broadcast %c0_i32_25 : i32 to vector<8x32xi32>
    %28 = arith.cmpi eq, %6, %27 : vector<8x32xi32>
    %cst_26 = arith.constant 0.000000e+00 : f32
    %29 = vector.broadcast %cst_26 : f32 to vector<8x32xf32>
    %30 = arith.select %28, %23, %29 : vector<8x32xi1>, vector<8x32xf32>
    %31 = arith.addf %21, %30 : vector<8x32xf32>
    %c0_27 = arith.constant 0 : index
    %c1_28 = arith.constant 1 : index
    %c0_29 = arith.constant 0 : index
    %c0_30 = arith.constant 0 : index
    %32 = vector.load %arg2[%c0_27, %c1_28, %c0_29, %c0_30] : memref<1x4x8x32xf32, #tpu.memory_space<vmem>>, vector<1x1x8x32xf32>
    %33 = vector.shape_cast %32 : vector<1x1x8x32xf32> to vector<8x32xf32>
    %34 = arith.subf %33, %19 : vector<8x32xf32>
    %35 = math.exp %34 : vector<8x32xf32>
    %36 = arith.addf %26, %35 : vector<8x32xf32>
    %c1_i32 = arith.constant 1 : i32
    %37 = vector.broadcast %c1_i32 : i32 to vector<8x32xi32>
    %38 = arith.cmpi eq, %6, %37 : vector<8x32xi32>
    %cst_31 = arith.constant 0.000000e+00 : f32
    %39 = vector.broadcast %cst_31 : f32 to vector<8x32xf32>
    %40 = arith.select %38, %33, %39 : vector<8x32xi1>, vector<8x32xf32>
    %41 = arith.addf %31, %40 : vector<8x32xf32>
    %c0_32 = arith.constant 0 : index
    %c2_33 = arith.constant 2 : index
    %c0_34 = arith.constant 0 : index
    %c0_35 = arith.constant 0 : index
    %42 = vector.load %arg2[%c0_32, %c2_33, %c0_34, %c0_35] : memref<1x4x8x32xf32, #tpu.memory_space<vmem>>, vector<1x1x8x32xf32>
    %43 = vector.shape_cast %42 : vector<1x1x8x32xf32> to vector<8x32xf32>
    %44 = arith.subf %43, %19 : vector<8x32xf32>
    %45 = math.exp %44 : vector<8x32xf32>
    %46 = arith.addf %36, %45 : vector<8x32xf32>
    %c2_i32 = arith.constant 2 : i32
    %47 = vector.broadcast %c2_i32 : i32 to vector<8x32xi32>
    %48 = arith.cmpi eq, %6, %47 : vector<8x32xi32>
    %cst_36 = arith.constant 0.000000e+00 : f32
    %49 = vector.broadcast %cst_36 : f32 to vector<8x32xf32>
    %50 = arith.select %48, %43, %49 : vector<8x32xi1>, vector<8x32xf32>
    %51 = arith.addf %41, %50 : vector<8x32xf32>
    %c0_37 = arith.constant 0 : index
    %c3_38 = arith.constant 3 : index
    %c0_39 = arith.constant 0 : index
    %c0_40 = arith.constant 0 : index
    %52 = vector.load %arg2[%c0_37, %c3_38, %c0_39, %c0_40] : memref<1x4x8x32xf32, #tpu.memory_space<vmem>>, vector<1x1x8x32xf32>
    %53 = vector.shape_cast %52 : vector<1x1x8x32xf32> to vector<8x32xf32>
    %54 = arith.subf %53, %19 : vector<8x32xf32>
    %55 = math.exp %54 : vector<8x32xf32>
    %56 = arith.addf %46, %55 : vector<8x32xf32>
    %c3_i32 = arith.constant 3 : i32
    %57 = vector.broadcast %c3_i32 : i32 to vector<8x32xi32>
    %58 = arith.cmpi eq, %6, %57 : vector<8x32xi32>
    %cst_41 = arith.constant 0.000000e+00 : f32
    %59 = vector.broadcast %cst_41 : f32 to vector<8x32xf32>
    %60 = arith.select %58, %53, %59 : vector<8x32xi1>, vector<8x32xf32>
    %61 = arith.addf %51, %60 : vector<8x32xf32>
    %62 = math.log %56 : vector<8x32xf32>
    %63 = arith.addf %19, %62 : vector<8x32xf32>
    %64 = arith.subf %63, %61 : vector<8x32xf32>
    %65 = tpu.iota {dimensions = array<i32: 1>} : vector<8x32xi32>
    %c32_i32 = arith.constant 32 : i32
    %66 = arith.muli %arg1, %c32_i32 : i32
    %67 = vector.broadcast %66 : i32 to vector<8x32xi32>
    %68 = arith.addi %67, %65 : vector<8x32xi32>
    %c32_i32_42 = arith.constant 32 : i32
    %69 = vector.broadcast %c32_i32_42 : i32 to vector<8x32xi32>
    %70 = arith.cmpi slt, %68, %69 : vector<8x32xi32>
    %c255_i32 = arith.constant 255 : i32
    %71 = vector.broadcast %c255_i32 : i32 to vector<8x32xi32>
    %72 = arith.cmpi ne, %6, %71 : vector<8x32xi32>
    %73 = arith.andi %72, %70 : vector<8x32xi1>
    %74 = arith.mulf %8, %8 : vector<8x32xf32>
    %cst_43 = arith.constant 0.000000e+00 : f32
    %75 = vector.broadcast %cst_43 : f32 to vector<8x32xf32>
    %76 = arith.select %70, %74, %75 : vector<8x32xi1>, vector<8x32xf32>
    %cst_44 = arith.constant 0.000000e+00 : f32
    %77 = vector.broadcast %cst_44 : f32 to vector<8x32xf32>
    %78 = arith.select %73, %64, %77 : vector<8x32xi1>, vector<8x32xf32>
    %c0_45 = arith.constant 0 : index
    %c0_46 = arith.constant 0 : index
    %79 = vector.load %arg6[%c0_45, %c0_46] : memref<8x32xf32, #tpu.memory_space<vmem>>, vector<8x32xf32>
    %80 = arith.mulf %76, %78 : vector<8x32xf32>
    %81 = arith.addf %79, %80 : vector<8x32xf32>
    %c0_47 = arith.constant 0 : index
    %c0_48 = arith.constant 0 : index
    %82 = vector.load %arg6[%c0_47, %c0_48] : memref<8x32xf32, #tpu.memory_space<vmem>>, vector<8x32xf32>
    tpu.vector_store %arg6[%c0_47, %c0_48], %81 {strides = array<i32>} : memref<8x32xf32, #tpu.memory_space<vmem>>, vector<8x32xf32>,
    %c0_49 = arith.constant 0 : index
    %c0_50 = arith.constant 0 : index
    %83 = vector.load %arg7[%c0_49, %c0_50] : memref<8x32xf32, #tpu.memory_space<vmem>>, vector<8x32xf32>
    %84 = arith.addf %83, %76 : vector<8x32xf32>
    %c0_51 = arith.constant 0 : index
    %c0_52 = arith.constant 0 : index
    %85 = vector.load %arg7[%c0_51, %c0_52] : memref<8x32xf32, #tpu.memory_space<vmem>>, vector<8x32xf32>
    tpu.vector_store %arg7[%c0_51, %c0_52], %84 {strides = array<i32>} : memref<8x32xf32, #tpu.memory_space<vmem>>, vector<8x32xf32>,
    %c1_i32_53 = arith.constant 1 : i32
    %86 = arith.cmpi eq, %arg0, %c1_i32_53 : i32
    %c0_i32_54 = arith.constant 0 : i32
    %87 = arith.cmpi eq, %arg1, %c0_i32_54 : i32
    %88 = arith.andi %86, %87 : i1
    %89 = arith.extui %88 : i1 to i32
    %c0_i32_55 = arith.constant 0 : i32
    %90 = arith.cmpi ne, %89, %c0_i32_55 : i32
    scf.if %90 {
      %c0_56 = arith.constant 0 : index
      %c0_57 = arith.constant 0 : index
      %91 = vector.load %arg6[%c0_56, %c0_57] : memref<8x32xf32, #tpu.memory_space<vmem>>, vector<8x32xf32>
      %92 = vector.shape_cast %91 : vector<8x32xf32> to vector<1x8x32xf32>
      %cst_58 = arith.constant dense<0.000000e+00> : vector<1xf32>
      %93 = vector.multi_reduction <add>, %92, %cst_58 [1, 2] : vector<1x8x32xf32> to vector<1xf32>
      %94 = vector.shape_cast %93 : vector<1xf32> to vector<1x1x1xf32>
      %95 = vector.extract %94[0, 0, 0] : f32 from vector<1x1x1xf32>
      %c0_59 = arith.constant 0 : index
      %c0_60 = arith.constant 0 : index
      %96 = vector.load %arg7[%c0_59, %c0_60] : memref<8x32xf32, #tpu.memory_space<vmem>>, vector<8x32xf32>
      %97 = vector.shape_cast %96 : vector<8x32xf32> to vector<1x8x32xf32>
      %cst_61 = arith.constant dense<0.000000e+00> : vector<1xf32>
      %98 = vector.multi_reduction <add>, %97, %cst_61 [1, 2] : vector<1x8x32xf32> to vector<1xf32>
      %99 = vector.shape_cast %98 : vector<1xf32> to vector<1x1x1xf32>
      %100 = vector.extract %99[0, 0, 0] : f32 from vector<1x1x1xf32>
      %cst_62 = arith.constant 9.99999996E-13 : f32
      %101 = arith.addf %100, %cst_62 : f32
      %102 = arith.divf %95, %101 : f32
      %103 = vector.broadcast %102 : f32 to vector<1x1xf32>
      %c0_63 = arith.constant 0 : index
      %c0_64 = arith.constant 0 : index
      %104 = vector.load %arg5[%c0_63, %c0_64] : memref<1x1xf32, #tpu.memory_space<vmem>>, vector<1x1xf32>
      tpu.vector_store %arg5[%c0_63, %c0_64], %103 {strides = array<i32>} : memref<1x1xf32, #tpu.memory_space<vmem>>, vector<1x1xf32>,
    } else {
    }
    return
  }
  func.func @transform_0(%arg0: i32, %arg1: i32) -> (i32, i32, i32, i32) {
    %c0_i32 = arith.constant 0 : i32
    %c0_i32_0 = arith.constant 0 : i32
    %c0_i32_1 = arith.constant 0 : i32
    return %arg0, %c0_i32, %c0_i32_0, %arg1 : i32, i32, i32, i32
  }
  func.func @transform_1(%arg0: i32, %arg1: i32) -> (i32, i32, i32) {
    %c0_i32 = arith.constant 0 : i32
    %c0_i32_0 = arith.constant 0 : i32
    return %arg0, %c0_i32, %arg1 : i32, i32, i32
  }
  func.func @transform_2(%arg0: i32, %arg1: i32) -> (i32, i32, i32) {
    %c0_i32 = arith.constant 0 : i32
    %c0_i32_0 = arith.constant 0 : i32
    return %arg0, %c0_i32, %arg1 : i32, i32, i32
  }
  func.func @transform_3(%arg0: i32, %arg1: i32) -> (i32, i32) {
    %c0_i32 = arith.constant 0 : i32
    %c0_i32_0 = arith.constant 0 : i32
    %c0_i32_1 = arith.constant 0 : i32
    return %c0_i32, %c0_i32_0 : i32, i32
  }
}

</mosaic_0001>

<bundles_post_ra>
// kernel: tpu_custom_call.1
= control target key start
LH: loop header
LB: loop body
LE: loop exit
PB: predicated region body
PF: predicated region fallthrough
CT: control target
= control target key end

     0   :  { %s966_s0 = inlined_call_operand.hbm [shape: f32[2,4,8,32], index: 0, kind: input, shape index: {}]   ;;  %s967_s1 = inlined_call_operand.hbm [shape: s32[2,8,32], index: 1, kind: input, shape index: {}]   ;;  %s968_s2 = inlined_call_operand.hbm [shape: f32[2,8,32], index: 2, kind: input, shape index: {}]   ;;  %s969_s3 = inlined_call_operand.hbm [shape: f32[1,1], index: 3, kind: output, shape index: {}]  }
   0x1   :  { %970 = sst [smem:[#allocation14_spill]] %s967_s1 }
   0x2   :  { %971 = sst [smem:[#allocation15_spill]] %s968_s2 }
   0x3   :  { %8 = vsyncpa [#allocation5], 0 }
   0x4   :  { %10 = vsyncpa [#allocation5 + $0x1], 0 }
   0x5   :  { %11 = vsyncpa [#allocation8], 0 }
   0x6   :  { %13 = vsyncpa [#allocation8 + $0x1], 0 }
   0x7   :  { %14 = vsyncpa [#allocation6], 0  ;;  %s831_s12 = smov 0   ;;  %s833_s13 = smov 0  }
   0x8   :  { %s835_s14 = smov 0   ;;  %s837_s15 = smov 0  }
   0x9   :  { %s839_s16 = smov 0   ;;  %s841_s17 = smov 0  }
   0xa LB: > { %s860_s18 = sadd.s32 4294967295, %s805_s17   ;;  %s32_s19 = sadd.s32 1, %s801_s16  ;;  %s805_s17 = sphi %s841_s17, %s20_s17   ;;  %s801_s16 = sphi %s839_s16, %s981_s16   ;;  %s797_s15 = sphi %s837_s15, %s980_s15   ;;  %s793_s14 = sphi %s835_s14, %s979_s14   ;;  %s789_s13 = sphi %s833_s13, %s978_s13   ;;  %s785_s12 = sphi %s831_s12, %s977_s12  }
   0xb   : > { %p34_p0 = scmp.ge.s32.totalorder %s32_s19, 2  ;;  %s41_s20 = sadd.s32 1, %s793_s14 }
   0xc   : > { %p48_p1 = scmp.ne.s32.totalorder %s793_s14, %s789_s13  ;;  %p49_p2 = scmp.eq.s32.totalorder %s805_s17, 0 }
   0xd   : > { %s983_s19 = smov (%p34_p0, %s32_s19), 0  ;;  %p54_p4 = scmp.ne.s32.totalorder %s789_s13, %s785_s12 }
   0xe   : > { %p50_p3 = por %p49_p2, %p48_p1  ;;  %s36_s21 = ssub.s32 %s801_s16, %s983_s19 }
   0xf   : > { %p55_p5 = scmp.eq.s32.totalorder %s860_s18, 0  ;;  %p39_p6 = scmp.eq.s32.totalorder %s36_s21, 0 }
  0x10   : > { %p562_p8 = scmp.lt.s32.totalorder %s805_s17, 2  ;;  %s882_s24 = sand.u32 1, %s793_s14  }
  0x11   : > { %p873_p7 = por %p55_p5, %p54_p4  ;;  %s178_s26 = sand.u32 1, %s805_s17  }
  0x12   : > { %s879_s23 = scalar_select %p39_p6, %s793_s14, %s41_s20  }
  0x13   : > { %p884_p9 = pnand %p562_p8, %p50_p3  ;;  %s516_s27 = sshll.u32 %s882_s24, 3 }
  0x14   : > { %s517_s28 = sshll.u32 %s801_s16, 3  ;;  %s974_s1 = sld [smem:[#allocation14_spill]] }
  0x15   : > { %s182_s5 = scalar_lea.vmem [#allocation7], %s516_s27  ;;  %s179_s8 = scalar_lea.sflag [#allocation8], %s178_s26 }
  0x16   : > { %s191_s6 = sshll.u32 %s182_s5, 4  ;;  %s975_s2 = sld [smem:[#allocation15_spill]]  ;;  %s192_s6 = int_to_ptr.vmem [resolvable:$true] %s191_s6 }
  0x17   : > { %p520_p10 = scmp.ge.s32.totalorder %s805_s17, 1  ;;  %p216_p11 = scmp.lt.s32.totalorder %s805_s17, 3 }
  0x18   : > { %s513_s20 = sshll.u32 %s882_s24, 5  ;;  %s533_s21 = sshll.u32 %s801_s16, 5 }
  0x19   : > { %p903_p12 = pnand %p520_p10, %p216_p11  ;;  %s165_s26 = scalar_lea.hbm %s966_s0, %s533_s21 }
  0x1a   : > { %s187_s4 = scalar_lea.hbm %s974_s1, %s517_s28  ;;  %s807_s9 = smov 128  }
  0x1b   : > { %s189_s7 = sshll.u32 %s187_s4, 4  ;;  %s159_s4 = scalar_lea.vmem [#allocation4], %s513_s20  ;;  %s190_s7 = int_to_ptr.hbm [resolvable:$true] %s189_s7 }
  0x1c   : > { %558 = dma.hbm_to_vmem [thread:$0]  (!%p884_p9), %s190_s7, 128, %s192_s6, %s179_s8  }
  0x1d   : > { %s207_s11 = scalar_lea.hbm %s975_s2, %s517_s28  ;;  %s168_s5 = sshll.u32 %s159_s4, 4  ;;  %s169_s5 = int_to_ptr.vmem [resolvable:$true] %s168_s5 }
  0x1e   : > { %s166_s6 = sshll.u32 %s165_s26, 4  ;;  %s209_s28 = sshll.u32 %s207_s11, 4  ;;  %s167_s6 = int_to_ptr.hbm [resolvable:$true] %s166_s6  ;;  %s210_s28 = int_to_ptr.hbm [resolvable:$true] %s209_s28 }
  0x1f   : > { %s156_s7 = scalar_lea.sflag [#allocation5], %s882_s24  ;;  %s808_s10 = smov 8  }
  0x20   : > { %555 = dma.hbm_to_vmem [thread:$0]  (!%p884_p9), %s167_s6, 512, %s169_s5, %s156_s7, %s807_s9, %s807_s9, %s808_s10  }
  0x21   : > { %s202_s1 = scalar_lea.vmem [#allocation9], %s516_s27  ;;  %220 = sbr.rel (%p903_p12) target bundleno = 367 (0x16f), region = 32 }
  0x22   : > { %s211_s2 = sshll.u32 %s202_s1, 4  ;;  %s222_s20 = sand.u32 (!%p903_p12), 1, %s789_s13   ;;  %s212_s2 = int_to_ptr.vmem [resolvable:$true] %s211_s2 }
  0x23   : > { %561 = dma.hbm_to_vmem [thread:$0]  (!%p884_p9), %s210_s28, 128, %s212_s2, %s179_s8  }
  0x24   : > { %s521_s21 = sshll.u32 (!%p903_p12), %s222_s20, 5  ;;  %s223_s11 = scalar_lea.sflag (!%p903_p12), [#allocation5], %s222_s20 }
  0x25   : > { %s226_s29 = scalar_lea.vmem (!%p903_p12), [#allocation4], %s521_s21 }
  0x26   : > { %772 = dma.done.wait (%p873_p7), %s223_s11, 512  }
  0x27   : > { %774 = vsyncadd (%p873_p7), %s223_s11, 4294966784  ;;  %s232_s1 = sand.u32 1, %s860_s18   ;;  %s522_s24 = sshll.u32 %s222_s20, 3 }
  0x28   : > { %s233_s25 = scalar_lea.sflag [#allocation8], %s232_s1  ;;  %s927_s2 = scalar_lea.vmem [#allocation7], %s522_s24 }
  0x29   : > { %776 = dma.done.wait (%p873_p7), %s233_s25, 256  }
  0x2a   : > { %778 = vsyncadd (%p873_p7), %s233_s25, 4294967040  ;;  %p275_p13 = scmp.eq.s32.totalorder %s797_s15, 0  ;;  %s246_s27 = scalar_lea.vmem [#allocation9], %s522_s24 }
  0x2b   : > { %vm281_vm0 = vcmask (%p275_p13), 261120   ;;  %v809_v0 = vmov (%p275_p13), 0.0  }
  0x2c   : > { %280 = sbr.rel (!%p275_p13) target bundleno = 49 (0x31), region = 48  ;;  %282 = vst.msk [vmem:[#allocation2] sm:$0xff] (%p275_p13), %vm281_vm0, %v809_v0 }
  0x2d   : > { %283 = vst.msk [vmem:[#allocation3] sm:$0xff] (%p275_p13), %vm281_vm0, %v809_v0 }
  0x31 PF: > { %v286_v1 = vld [vmem:[%s226_s29] sm:$0xff]  ;;  %p347_p0 = scmp.eq.s32.totalorder %s797_s15, 1  ;;  %v525_v2 = vld [vmem:[%s226_s29 + $0x8] sm:$0xff]  ;;  %v526_v3 = vld [vmem:[%s226_s29 + $0x10] sm:$0xff]  ;;  %v328_v4 = vlaneseq  ;;  %vm342_vm2 = vcmask 261120  }
  0x32   : > { %v285_v5 = vld [vmem:[%s246_s27] sm:$0xff]  ;;  %v289_v6 = vmax.f32 %v286_v1, %v525_v2  ;;  %v284_v23 = vld [vmem:[%s927_s2] sm:$0xff]  ;;  %vm393_vm13 = vcmask (%p347_p0), 0  }
  0x33   : > { %v527_v7 = vld [vmem:[%s226_s29 + $0x18] sm:$0xff]  ;;  %v329_v8 = vand.u32 127, %v328_v4  ;;  %v336_v10 = vmul.f32 %v285_v5, %v285_v5  ;;  %vm300_vm3 = vcmp.eq.s32.totalorder %v284_v23, 0  ;;  %vm307_vm4 = vcmp.eq.s32.totalorder %v284_v23, 1  ;;  %v339_v43 = vld [vmem:[#allocation2] sm:$0xff] }
  0x34   : > { %v292_v9 = vmax.f32 %v289_v6, %v526_v3  ;;  %v344_v17 = vld [vmem:[#allocation3] sm:$0xff]  ;;  %v301_v29 = vsel %vm300_vm3, %v286_v1, 0.0  ;;  %v308_v30 = vsel %vm307_vm4, %v525_v2, 0.0  ;;  %vm314_vm5 = vcmp.eq.s32.totalorder %v284_v23, 2 }
  0x35   : > { %vm333_vm1 = vcmp.lt.s32.totalorder %v329_v8, 32  ;;  %v309_v33 = vadd.f32 %v308_v30, %v301_v29  ;;  %v315_v34 = vsel %vm314_vm5, %v526_v3, 0.0  ;;  %vm321_vm6 = vcmp.eq.s32.totalorder %v284_v23, 3 }
  0x36   : > { %v295_v11 = vmax.f32 %v292_v9, %v527_v7  ;;  %v337_v16 = vsel %vm333_vm1, %v336_v10, 0.0  ;;  %v322_v36 = vsel %vm321_vm6, %v527_v7, 0.0  ;;  %vm334_vm7 = vcmp.ne.s32.totalorder %v284_v23, 255 }
  0x37   : > { %v345_v21 = vadd.f32 %v344_v17, %v337_v16  ;;  %v316_v35 = vadd.f32 %v315_v34, %v309_v33  ;;  %vm335_vm8 = vmand %vm334_vm7, %vm333_vm1 }
  0x38   : > { %v296_v12 = vsub.f32 %v286_v1, %v295_v11  ;;  %v303_v13 = vsub.f32 %v525_v2, %v295_v11  ;;  %v310_v14 = vsub.f32 %v526_v3, %v295_v11  ;;  %v317_v15 = vsub.f32 %v527_v7, %v295_v11 }
  0x39   : > { %346 = vst.msk [vmem:[#allocation3] sm:$0xff] %vm342_vm2, %v345_v21  ;;  %v323_v38 = vadd.f32 %v322_v36, %v316_v35 }
  0x3a   : > { %v297_v18 = vmul.f32 1.442695, %v296_v12  ;;  %v304_v19 = vmul.f32 1.442695, %v303_v13  ;;  %v311_v20 = vmul.f32 1.442695, %v310_v14 }
  0x3b   : > { %v318_v22 = vmul.f32 1.442695, %v317_v15 }
  0x3c   : > { %617 = vpow2.f32 %v297_v18 }
  0x3d   : > { %619 = vpow2.f32 %v304_v19 }
  0x3e   : > { %621 = vpow2.f32 %v311_v20 }
  0x3f   : > { %623 = vpow2.f32 %v318_v22 }
  0x40   : > { %v363_v48 = vld [vmem:[#allocation3] sm:$0xff] (%p347_p0) }
  0x41   : > { %v364_v49 = vsel (%p347_p0), %vm342_vm2, %v363_v48, 0.0 }
  0x42   : > { %v618_v24 = vpop.eup %617 }
  0x43   : > { %v620_v25 = vpop.eup %619 }
  0x44   : > { %v622_v26 = vpop.eup %621  ;;  %v306_v27 = vadd.f32 %v620_v25, %v618_v24 }
  0x45   : > { %v624_v28 = vpop.eup %623 }
  0x46   : > { %v313_v31 = vadd.f32 %v622_v26, %v306_v27 }
  0x48   : > { %v320_v32 = vadd.f32 %v624_v28, %v313_v31 }
  0x4a   : > { %625 = vlog2.f32 %v320_v32 }
  0x50   : > { %v626_v37 = vpop.eup %625 }
  0x51   : > { %v325_v39 = vmul.f32 0.6931472, %v626_v37 }
  0x53   : > { %v326_v40 = vadd.f32 %v325_v39, %v295_v11 }
  0x55   : > { %v327_v41 = vsub.f32 %v326_v40, %v323_v38 }
  0x57   : > { %v338_v42 = vsel %vm335_vm8, %v327_v41, 0.0 }
  0x58   : > { %v340_v44 = vmul.f32 %v338_v42, %v337_v16  ;;  %351 = sbr.rel (!%p347_p0) target bundleno = 361 (0x169), region = 52 }
  0x5a   : > { %v341_v45 = vadd.f32 %v340_v44, %v339_v43 }
  0x5c   : > { %343 = vst.msk [vmem:[#allocation2] sm:$0xff] %vm342_vm2, %v341_v45 }
  0x63   : > { %v352_v46 = vld [vmem:[#allocation2] sm:$0xff] }
  0x64   : > { %v353_v47 = vsel %vm342_vm2, %v352_v46, 0.0 }
  0x65   : > { %354 = vadd.xlane.f32.xlu0 %v353_v47 }
  0x6d   : > { %365 = vadd.xlane.f32.xlu0 %v364_v49 }
  0xd8   : > { %v355_v50 = vpop.xlane.xlu0 %354 }
  0xd9   : > { %v356_v51 = vrot.slane %v355_v50, 4 }
  0xdb   : > { %v357_v52 = vadd.f32 %v356_v51, %v355_v50 }
  0xdd   : > { %v358_v53 = vrot.slane %v357_v52, 2 }
  0xdf   : > { %v359_v54 = vadd.f32 %v358_v53, %v357_v52 }
  0xe0   : > { %v366_v55 = vpop.xlane.xlu0 %365 }
  0xe1   : > { %v367_v56 = vrot.slane %v366_v55, 4  ;;  %v360_v57 = vrot.slane %v359_v54, 1 }
  0xe3   : > { %v368_v58 = vadd.f32 %v367_v56, %v366_v55  ;;  %v361_v59 = vadd.f32 %v360_v57, %v359_v54 }
  0xe5   : > { %v369_v60 = vrot.slane %v368_v58, 2  ;;  %536 = vpush %v361_v59 }
  0xe7   : > { %v370_v61 = vadd.f32 %v369_v60, %v368_v58 }
  0xe9   : > { %v371_v62 = vrot.slane %v370_v61, 1 }
  0xeb   : > { %v372_v63 = vadd.f32 %v371_v62, %v370_v61 }
  0xed   : > { %538 = vpush %v372_v63 }
 0x116   : > { %s537_s15 = spop %536 }
 0x11e   : > { %s539_s22 = spop %538 }
 0x11f   : > { %s374_s8 = sadd.f32 1e-12, %s539_s22 }
 0x121   : > { %v375_v0 = vstv %s374_s8 }
 0x122   : > { %627 = vrcp.f32 %v375_v0  ;;  %v387_v4 = vand.u32 2147483648, %v375_v0  ;;  %v385_v6 = vand.u32 2147483647, %v375_v0  ;;  %vm381_vm10 = vweird.f32 %v375_v0 }
 0x124   : > { %v388_v8 = vor.u32 1.1754944e-38, %v387_v4  ;;  %vm386_vm12 = vcmp.eq.f32.partialorder %v385_v6, 8.507059e+37 }
 0x128   : > { %v628_v1 = vpop.eup %627 }
 0x129   : > { %v377_v2 = vmul.f32 %v628_v1, %v375_v0  ;;  %vm382_vm9 = vweird.f32 %v628_v1 }
 0x12a   : > { %vm383_vm11 = vmor %vm381_vm10, %vm382_vm9 }
 0x12b   : > { %v378_v3 = vsub.f32 1.0, %v377_v2 }
 0x12d   : > { %v379_v5 = vmul.f32 %v628_v1, %v378_v3 }
 0x12f   : > { %v380_v7 = vadd.f32 %v628_v1, %v379_v5 }
 0x131   : > { %v384_v9 = vsel %vm383_vm11, %v628_v1, %v380_v7 }
 0x132   : > { %v389_v10 = vsel %vm386_vm12, %v388_v8, %v384_v9 }
 0x133   : > { %540 = vpush %v389_v10 }
 0x164   : > { %s541_s12 = spop %540 }
 0x165   : > { %s391_s30 = smul.f32 %s541_s12, %s537_s15 }
 0x167   : > { %v392_v11 = vstv %s391_s30 }
 0x168   : > { %394 = vst.msk [vmem:[#allocation10] sm:$0x1] %vm393_vm13, %v392_v11 }
 0x169 PF: > { %p563_p1 = scmp.eq.s32.totalorder %s860_s18, 1  ;;  %s403_s5 = sshll.u32 %s969_s3, 4  ;;  %s404_s5 = int_to_ptr.hbm [resolvable:$true] %s403_s5 }
 0x16a   : > { %s810_s6 = smov [#allocation10]  }
 0x16b   : > { %s401_s28 = sshll.u32 %s810_s6, 4  ;;  %s402_s28 = int_to_ptr.vmem [resolvable:$true] %s401_s28 }
 0x16c   : > { %549 = dma.vmem_to_hbm [thread:$0]  (%p563_p1), %s402_s28, 16, %s404_s5, [#allocation6]  }
 0x16d   : > { %780 = dma.done.wait (%p563_p1), [#allocation6], 16  }
 0x16e   : > { %782 = vsyncadd (%p563_p1), [#allocation6], 4294967280 }
 0x16f PF: > { %s20_s17 = sadd.s32 1, %s805_s17   ;;  %s977_s12 = smov %s789_s13 }
 0x170   : > { %p17_p2 = scmp.ge.s32.totalorder %s20_s17, 4   ;;  %s978_s13 = smov %s793_s14 }
 0x171   : > { %s979_s14 = smov %s879_s23  ;;  %s980_s15 = smov %s801_s16 }
 0x172   : > { %s981_s16 = smov %s983_s19  ;;  %19 = sbr.rel (!%p17_p2) target bundleno = 10 (0xa), region = 104 }
 0x177   :  { %417 = vsyncpa [#allocation5], 1 }
 0x178   :  { %419 = vsyncpa [#allocation5 + $0x1], 1 }
 0x179   :  { %420 = vsyncpa [#allocation8], 1 }
 0x17a   :  { %422 = vsyncpa [#allocation8 + $0x1], 1 }
 0x17b   :  { %423 = vsyncpa [#allocation6], 1 }
 0x17c   :  { %425 = vsyncpa [#allocation6 + $0x1], 1 }

</bundles_post_ra>
